<compile_context>
chip_gen: v7x
topology: tpu7x:2x2x1
jax: 0.10.0
libtpu: 0.0.40
codegen_flags: <defaults>
</compile_context>

<pallas_src>
import jax
import jax.numpy as jnp
from jax.experimental import pallas as pl
from jax.experimental.pallas import tpu as pltpu


# --------------------------------------------------------------------------
# Pallas kernels
# --------------------------------------------------------------------------
def conv_stats_kernel(p_ref, w_ref, y_ref, s_ref):
    """Fused im2col-matmul tile + per-tile channel statistics (lane-dense layout).

    p_ref : (KD, TR)   bf16 im2col patch columns of this tile (HW on lanes)
    w_ref : (CO, KD)   bf16 correlation weights (same block every step -> resident)
    y_ref : (CO, TR)   bf16 conv output tile
    s_ref : (CO, 2)    f32 per-tile [sum, sum_of_squares] over the TR columns
    """
    acc = jnp.dot(w_ref[...], p_ref[...], preferred_element_type=jnp.float32)  # (CO, TR) f32
    y_ref[...] = acc.astype(y_ref.dtype)
    # Stats from the f32 accumulator (not the bf16-rounded y).  No concat: write slices.
    s_ref[:, 0:1] = jnp.sum(acc, axis=1, keepdims=True)
    s_ref[:, 1:2] = jnp.sum(acc * acc, axis=1, keepdims=True)


def cbn_relu_kernel(y_ref, scale_ref, shift_ref, o_ref):
    """Conditional BN (pre-folded per-sample scale/shift) + ReLU, lane-dense tiles.

    y_ref     : (CO, TR) bf16 conv output tile of one sample
    scale_ref : (CO, 1)  f32  gamma[c_n] * rsqrt(var + eps)
    shift_ref : (CO, 1)  f32  beta[c_n]  - mean * scale
    o_ref     : (CO, TR) f32
    """
    y = y_ref[...].astype(jnp.float32)
    o_ref[...] = jnp.maximum(y * scale_ref[...] + shift_ref[...], 0.0)


# --------------------------------------------------------------------------
# Wrapper (glue in plain JAX, hot paths in Pallas)
# --------------------------------------------------------------------------
def tr_conv2d_block_cbn(x_nchw, c, params, *, stride=1, padding=0,
                        row_tile=1024, eps=1e-5,
                        vmem_limit_bytes=40 * 1024 * 1024):
    w_ct = params["conv_w"]        # (C_in, C_out, K, K)  ConvTranspose2d weight layout
    gamma_emb = params["gamma"]    # (n_class, C_out)
    beta_emb = params["beta"]      # (n_class, C_out)
    # NOTE: params["conv_b"] is intentionally unused (cancels under train-mode BN).

    N, C_in, H, W = x_nchw.shape
    C_out = w_ct.shape[1]
    K = w_ct.shape[2]

    # ---- glue: ZeroPad2d (stay NCHW the whole way; output layout is then NCHW for free)
    x = x_nchw.astype(jnp.float32)
    if padding > 0:
        x = jnp.pad(x, ((0, 0), (0, 0), (padding, padding), (padding, padding)))
    _, _, Hp, Wp = x.shape

    # ---- transposed conv == dilate by stride, pad by K-1, correlate with flipped kernel
    if stride > 1:
        Hd = (Hp - 1) * stride + 1
        Wd = (Wp - 1) * stride + 1
        xd = jnp.zeros((N, C_in, Hd, Wd), x.dtype).at[:, :, ::stride, ::stride].set(x)
    else:
        Hd, Wd = Hp, Wp
        xd = x
    # cast to bf16 BEFORE the K^2 slicing/concat so the duplicated glue slab is half-size
    xp = jnp.pad(xd, ((0, 0), (0, 0), (K - 1, K - 1), (K - 1, K - 1))).astype(jnp.bfloat16)
    H_out = Hd + K - 1
    W_out = Wd + K - 1
    HW = H_out * W_out
    KD = K * K * C_in

    # ---- im2col in TRANSPOSED layout: (N, KD, HW), feature order (kh, kw, c_in) ----
    wins = [xp[:, :, i:i + H_out, j:j + W_out].reshape(N, C_in, HW)
            for i in range(K) for j in range(K)]
    patches_t = jnp.concatenate(wins, axis=1)                 # (N, KD, HW) bf16

    # correlation weight: w_corr[kh, kw, ci, co] = w_ct[ci, co, K-1-kh, K-1-kw]
    w_corr = jnp.transpose(w_ct, (2, 3, 0, 1))[::-1, ::-1]    # (K, K, C_in, C_out)
    w_t = jnp.transpose(w_corr.reshape(KD, C_out)).astype(jnp.bfloat16)   # (C_out, KD)

    # ---- lane tiling: tr lanes/step (multiple of 128), capped by a VMEM budget ----
    row_tile = max(128, (row_tile // 128) * 128)
    # patches double-buffer per lane-column: 2 bufs * KD rows * 2 B; budget ~1/3 of scoped VMEM
    tr_cap = max(128, ((vmem_limit_bytes // 3) // (4 * KD)) // 128 * 128)
    tr = min(row_tile, ((HW + 127) // 128) * 128, tr_cap)
    HW_pad = ((HW + tr - 1) // tr) * tr
    if HW_pad != HW:
        patches_t = jnp.pad(patches_t, ((0, 0), (0, 0), (0, HW_pad - HW)))
    n_tiles = HW_pad // tr

    cparams = pltpu.CompilerParams(
        dimension_semantics=("parallel", "parallel"),
        vmem_limit_bytes=vmem_limit_bytes)

    # ---- Pallas kernel A: matmul (bf16 in / f32 acc) + per-tile channel stats ----
    y, partial = pl.pallas_call(
        conv_stats_kernel,
        out_shape=(jax.ShapeDtypeStruct((N, C_out, HW_pad), jnp.bfloat16),
                   jax.ShapeDtypeStruct((N, n_tiles, C_out, 2), jnp.float32)),
        grid_spec=pltpu.PrefetchScalarGridSpec(
            num_scalar_prefetch=0,
            grid=(N, n_tiles),
            in_specs=[
                pl.BlockSpec((None, KD, tr), lambda n, i: (n, 0, i)),
                pl.BlockSpec((C_out, KD), lambda n, i: (0, 0)),
            ],
            out_specs=(
                pl.BlockSpec((None, C_out, tr), lambda n, i: (n, 0, i)),
                pl.BlockSpec((None, None, C_out, 2), lambda n, i: (n, i, 0, 0)),
            ),
        ),
        compiler_params=cparams,
    )(patches_t, w_t)

    # ---- glue (tiny vectors): finalize batch stats, fold gamma[c]/beta[c] ----
    # Zero pad columns contribute 0 to sum / sumsq, so divide by the true count.
    sums = jnp.sum(partial, axis=(0, 1))                              # (C_out, 2)
    count = jnp.float32(N * HW)
    mean = sums[:, 0] / count
    var = jnp.maximum(sums[:, 1] / count - mean * mean, 0.0)          # biased var (PyTorch BN)
    inv_std = jax.lax.rsqrt(var + eps)
    g = gamma_emb[c].astype(jnp.float32)                              # (N, C_out)
    b = beta_emb[c].astype(jnp.float32)                               # (N, C_out)
    scale = (g * inv_std[None, :]).reshape(N, C_out, 1)
    shift = (b - mean[None, :] * g * inv_std[None, :]).reshape(N, C_out, 1)

    # ---- Pallas kernel B: tiled conditional BN apply + ReLU (lane-dense, NCHW-native) ----
    out = pl.pallas_call(
        cbn_relu_kernel,
        out_shape=jax.ShapeDtypeStruct((N, C_out, HW_pad), jnp.float32),
        grid_spec=pltpu.PrefetchScalarGridSpec(
            num_scalar_prefetch=0,
            grid=(N, n_tiles),
            in_specs=[
                pl.BlockSpec((None, C_out, tr), lambda n, i: (n, 0, i)),
                pl.BlockSpec((None, C_out, 1), lambda n, i: (n, 0, 0)),
                pl.BlockSpec((None, C_out, 1), lambda n, i: (n, 0, 0)),
            ],
            out_specs=pl.BlockSpec((None, C_out, tr), lambda n, i: (n, 0, i)),
        ),
        compiler_params=cparams,
    )(y, scale, shift)

    # crop the lane padding; result is already NCHW (no transpose pass needed).
    return out[:, :, :HW].reshape(N, C_out, H_out, W_out)


# --------------------------------------------------------------------------
# Main
# --------------------------------------------------------------------------
if __name__ == "__main__":
    key = jax.random.PRNGKey(0)
    k1, k2, k3, k4, k5, k6 = jax.random.split(key, 6)

    # module hyper-params (small, consistent with the PyTorch __init__)
    N, C_in, H, W = 2, 4, 16, 16
    C_out, K, n_class = 8, 3, 10
    stride, padding = 1, 1

    x = jax.random.normal(k1, (N, C_in, H, W), jnp.float32)
    c = jax.random.randint(k2, (N,), 0, n_class)

    params = {
        "conv_w": 0.1 * jax.random.normal(k3, (C_in, C_out, K, K), jnp.float32),
        "conv_b": 0.1 * jax.random.normal(k4, (C_out,), jnp.float32),
        "gamma": 1.0 + 0.1 * jax.random.normal(k5, (n_class, C_out), jnp.float32),
        "beta": 0.1 * jax.random.normal(k6, (n_class, C_out), jnp.float32),
    }

    out = tr_conv2d_block_cbn(x, c, params, stride=stride, padding=padding)
    out = jax.block_until_ready(out)

    # ---- reference (pure JAX / XLA, f32, with conv bias; bias cancels under BN) ----
    x_pad = jnp.pad(x, ((0, 0), (0, 0), (padding, padding), (padding, padding)))
    w_ref = jnp.transpose(params["conv_w"], (1, 0, 2, 3))[:, :, ::-1, ::-1]  # (C_out, C_in, K, K)
    y_ref = jax.lax.conv_general_dilated(
        x_pad, w_ref,
        window_strides=(1, 1),
        padding=[(K - 1, K - 1), (K - 1, K - 1)],
        lhs_dilation=(stride, stride),
        dimension_numbers=("NCHW", "OIHW", "NCHW"),
        precision=jax.lax.Precision.HIGHEST,
    ) + params["conv_b"][None, :, None, None]
    mean = jnp.mean(y_ref, axis=(0, 2, 3), keepdims=True)
    var = jnp.mean((y_ref - mean) ** 2, axis=(0, 2, 3), keepdims=True)
    y_hat = (y_ref - mean) / jnp.sqrt(var + 1e-5)
    g = params["gamma"][c][:, :, None, None]
    b = params["beta"][c][:, :, None, None]
    ref = jnp.maximum(y_hat * g + b, 0.0)

    assert out.shape == ref.shape, (out.shape, ref.shape)
    max_err = float(jnp.max(jnp.abs(out - ref)))
    # bf16 matmul operands + bf16 intermediate y (f32 accumulation & f32 stats) ->
    # tolerance relaxed vs the pure-f32 reference.
    assert jnp.allclose(out, ref, atol=4e-2, rtol=4e-2), f"max_err={max_err}"

    print("KERNEL_OK")
</pallas_src>

<mosaic_0001>
module attributes {stable_mosaic.version = 11 : i64} {
  func.func @conv_stats_kernel(%arg0: i32, %arg1: i32, %arg2: memref<1x36x512xbf16, #tpu.memory_space<vmem>>, %arg3: memref<8x36xbf16, #tpu.memory_space<vmem>>, %arg4: memref<1x8x512xbf16, #tpu.memory_space<vmem>>, %arg5: memref<1x1x8x2xf32, #tpu.memory_space<vmem>>) attributes {dimension_semantics = [#tpu.dimension_semantics<parallel>, #tpu.dimension_semantics<parallel>], iteration_bounds = array<i64: 2, 1>, scalar_prefetch = 0 : i64, scratch_operands = 0 : i64, tpu.core_type = #tpu.core_type<tc>, window_params = [{transform_indices = @transform_0, window_bounds = array<i64: 1, 36, 512>}, {pipeline_mode = #tpu.pipeline_mode<synchronous>, transform_indices = @transform_1, window_bounds = array<i64: 8, 36>}, {transform_indices = @transform_2, window_bounds = array<i64: 1, 8, 512>}, {transform_indices = @transform_3, window_bounds = array<i64: 1, 1, 8, 2>}]} {
    %c0 = arith.constant 0 : index
    %c0_0 = arith.constant 0 : index
    %0 = vector.load %arg3[%c0, %c0_0] : memref<8x36xbf16, #tpu.memory_space<vmem>>, vector<8x36xbf16>
    %c0_1 = arith.constant 0 : index
    %c0_2 = arith.constant 0 : index
    %c0_3 = arith.constant 0 : index
    %1 = vector.load %arg2[%c0_1, %c0_2, %c0_3] : memref<1x36x512xbf16, #tpu.memory_space<vmem>>, vector<1x36x512xbf16>
    %2 = vector.shape_cast %1 : vector<1x36x512xbf16> to vector<36x512xbf16>
    %cst = arith.constant dense<0.000000e+00> : vector<8x512xf32>
    %3 = tpu.matmul %0, %2, %cst {dimension_numbers = #tpu.dot_dimension_numbers<[1], [0], [0], [1], [0, 0, 1, 1], [], []>} : vector<8x36xbf16>, vector<36x512xbf16>, vector<8x512xf32> -> vector<8x512xf32>
    %4 = arith.truncf %3 : vector<8x512xf32> to vector<8x512xbf16>
    %c0_4 = arith.constant 0 : index
    %c0_5 = arith.constant 0 : index
    %c0_6 = arith.constant 0 : index
    %5 = vector.load %arg4[%c0_4, %c0_5, %c0_6] : memref<1x8x512xbf16, #tpu.memory_space<vmem>>, vector<1x8x512xbf16>
    %6 = vector.shape_cast %5 : vector<1x8x512xbf16> to vector<8x512xbf16>
    %7 = vector.shape_cast %4 : vector<8x512xbf16> to vector<1x8x512xbf16>
    tpu.vector_store %arg4[%c0_4, %c0_5, %c0_6], %7 {strides = array<i32>} : memref<1x8x512xbf16, #tpu.memory_space<vmem>>, vector<1x8x512xbf16>,
    %cst_7 = arith.constant dense<0.000000e+00> : vector<8xf32>
    %8 = vector.multi_reduction <add>, %3, %cst_7 [1] : vector<8x512xf32> to vector<8xf32>
    %9 = vector.shape_cast %8 : vector<8xf32> to vector<8x1xf32>
    %c0_8 = arith.constant 0 : index
    %c0_9 = arith.constant 0 : index
    %c0_10 = arith.constant 0 : index
    %c0_11 = arith.constant 0 : index
    %10 = vector.load %arg5[%c0_8, %c0_9, %c0_10, %c0_11] : memref<1x1x8x2xf32, #tpu.memory_space<vmem>>, vector<1x1x8x1xf32>
    %11 = vector.shape_cast %10 : vector<1x1x8x1xf32> to vector<8x1xf32>
    %12 = vector.shape_cast %9 : vector<8x1xf32> to vector<1x1x8x1xf32>
    tpu.vector_store %arg5[%c0_8, %c0_9, %c0_10, %c0_11], %12 {strides = array<i32>} : memref<1x1x8x2xf32, #tpu.memory_space<vmem>>, vector<1x1x8x1xf32>,
    %13 = arith.mulf %3, %3 : vector<8x512xf32>
    %cst_12 = arith.constant dense<0.000000e+00> : vector<8xf32>
    %14 = vector.multi_reduction <add>, %13, %cst_12 [1] : vector<8x512xf32> to vector<8xf32>
    %15 = vector.shape_cast %14 : vector<8xf32> to vector<8x1xf32>
    %c0_13 = arith.constant 0 : index
    %c0_14 = arith.constant 0 : index
    %c0_15 = arith.constant 0 : index
    %c1 = arith.constant 1 : index
    %16 = vector.load %arg5[%c0_13, %c0_14, %c0_15, %c1] : memref<1x1x8x2xf32, #tpu.memory_space<vmem>>, vector<1x1x8x1xf32>
    %17 = vector.shape_cast %16 : vector<1x1x8x1xf32> to vector<8x1xf32>
    %18 = vector.shape_cast %15 : vector<8x1xf32> to vector<1x1x8x1xf32>
    tpu.vector_store %arg5[%c0_13, %c0_14, %c0_15, %c1], %18 {strides = array<i32>} : memref<1x1x8x2xf32, #tpu.memory_space<vmem>>, vector<1x1x8x1xf32>,
    return
  }
  func.func @transform_0(%arg0: i32, %arg1: i32) -> (i32, i32, i32) {
    %c0_i32 = arith.constant 0 : i32
    %c0_i32_0 = arith.constant 0 : i32
    return %arg0, %c0_i32, %arg1 : i32, i32, i32
  }
  func.func @transform_1(%arg0: i32, %arg1: i32) -> (i32, i32) {
    %c0_i32 = arith.constant 0 : i32
    %c0_i32_0 = arith.constant 0 : i32
    %c0_i32_1 = arith.constant 0 : i32
    return %c0_i32, %c0_i32_0 : i32, i32
  }
  func.func @transform_2(%arg0: i32, %arg1: i32) -> (i32, i32, i32) {
    %c0_i32 = arith.constant 0 : i32
    %c0_i32_0 = arith.constant 0 : i32
    return %arg0, %c0_i32, %arg1 : i32, i32, i32
  }
  func.func @transform_3(%arg0: i32, %arg1: i32) -> (i32, i32, i32, i32) {
    %c0_i32 = arith.constant 0 : i32
    %c0_i32_0 = arith.constant 0 : i32
    %c0_i32_1 = arith.constant 0 : i32
    return %arg0, %arg1, %c0_i32, %c0_i32_0 : i32, i32, i32, i32
  }
}

</mosaic_0001>

<bundles_post_ra>
// kernel: tpu_custom_call.1
= control target key start
LH: loop header
LB: loop body
LE: loop exit
PB: predicated region body
PF: predicated region fallthrough
CT: control target
= control target key end

     0   :  { %9 = vsyncpa [#allocation3], 0  ;;  %s879_s0 = inlined_call_operand.vmem [shape: bf16[2,36,512], index: 0, kind: input, shape index: {}]   ;;  %s880_s1 = inlined_call_operand.vmem [shape: bf16[8,36], index: 1, kind: input, shape index: {}]   ;;  %s881_s2 = inlined_call_operand.hbm [shape: bf16[2,8,512], index: 2, kind: output, shape index: {0}]   ;;  %s882_s3 = inlined_call_operand.vmem [shape: f32[2,1,8,2], index: 3, kind: output, shape index: {1}]  }
   0x1   :  { %11 = vsyncpa [#allocation3 + $0x1], 0  ;;  %s759_s12 = smov 0   ;;  %s761_s13 = smov 0  }
   0x2   :  { %s763_s14 = smov 0   ;;  %s765_s15 = smov 0  }
   0x3   :  { %s767_s16 = smov 0   ;;  %s769_s17 = smov 0  }
   0x4 LB: > { %s550_s18 = sadd.s32 4294967295, %s735_s17   ;;  %s551_s19 = sadd.s32 4294967294, %s735_s17   ;;  %s735_s17 = sphi %s769_s17, %s17_s17   ;;  %s731_s16 = sphi %s767_s16, %s889_s16   ;;  %s727_s15 = sphi %s765_s15, %s888_s15   ;;  %s723_s14 = sphi %s763_s14, %s887_s14   ;;  %s719_s13 = sphi %s761_s13, %s886_s13   ;;  %s715_s12 = sphi %s759_s12, %s885_s12  }
   0x5   : > { %s29_s20 = sadd.s32 1, %s731_s16  ;;  %s87_s21 = sadd.s32 1, %s723_s14 }
   0x6   : > { %p31_p0 = scmp.ge.s32.totalorder %s29_s20, 2  ;;  %p97_p1 = scmp.ne.s32.totalorder %s723_s14, %s719_s13 }
   0x7   : > { %p98_p2 = scmp.eq.s32.totalorder %s550_s18, 1  ;;  %p103_p3 = scmp.ne.s32.totalorder %s719_s13, %s715_s12 }
   0x8   : > { %s891_s20 = smov (%p31_p0, %s29_s20), 0  ;;  %p104_p5 = scmp.eq.s32.totalorder %s551_s19, 1 }
   0x9   : > { %p799_p4 = por %p98_p2, %p97_p1  ;;  %s82_s23 = ssub.s32 %s731_s16, %s891_s20 }
   0xa   : > { %p554_p6 = scmp.ge.s32.totalorder %s735_s17, 1  ;;  %p85_p7 = scmp.eq.s32.totalorder %s82_s23, 0 }
   0xb   : > { %p806_p8 = por %p104_p5, %p103_p3  ;;  %p166_p9 = scmp.lt.s32.totalorder %s735_s17, 3 }
   0xc   : > { %s812_s25 = scalar_select %p85_p7, %s723_s14, %s87_s21  }
   0xd   : > { %p167_p10 = pnand %p554_p6, %p166_p9 }
   0xe   : > { %p202_p11 = scmp.lt.s32.totalorder (!%p167_p10), %s727_s15, 1  ;;  %v737_v0 = vmov (!%p167_p10), 0   ;;  %vm285_vm0 = vcmask (!%p167_p10), 1041408   ;;  %v220_v17 = vld [vmem:[%s880_s1] sm:$0xf] (!%p167_p10)  ;;  %vm281_vm1 = vcmask (!%p167_p10), 293888  }
   0xf   : > { %170 = sbr.rel (%p167_p10) target bundleno = 406 (0x196), region = 28  ;;  %330 = vmatprep.mubr.bf16.mxu0 (!%p167_p10), %v737_v0  ;;  %371 = vmatprep.mubr.bf16.mxu1 (!%p167_p10), %v737_v0  ;;  %s189_s6 = sand.u32 (!%p167_p10), 1, %s719_s13  }
  0x10   : > { %s555_s7 = sshll.u32 (!%p167_p10), %s189_s6, 4  ;;  %s583_s9 = sshll.u32 (!%p167_p10), %s727_s15, 8 }
  0x11   : > { %s191_s8 = scalar_lea.vmem (!%p167_p10), [#allocation2], %s555_s7  ;;  %s832_s19 = scalar_lea.hbm (!%p167_p10), %s881_s2, %s583_s9 }
  0x12   : > { %s440_s10 = sshll.u32 (!%p167_p10), %s191_s8, 4  ;;  %s417_s21 = scalar_lea.sflag (!%p167_p10), [#allocation3], %s189_s6  ;;  %s441_s10 = int_to_ptr.vmem [resolvable:$true] %s440_s10 }
  0x13   : > { %s657_s23 = scalar_lea.vmem (!%p167_p10), %s441_s10, 256 }
  0x14   : > { %p658_p12 = scmp.ne.s32.totalorder (!%p167_p10), %s441_s10, %s657_s23 }
  0x16   : > { %s816_s26 = scalar_select %p202_p11, %s727_s15, 1 }
  0x17   : > { %p659_p13 = pnand %p658_p12, %p799_p4 }
  0x18   : > { %s584_s27 = smul.u32 80, %s816_s26 }
  0x19   : > { %p660_p0 = pneg %p659_p13 }
  0x1a   : > { %s209_s30 = scalar_lea.vmem %s879_s0, %s584_s27  ;;  %s738_s27 = smov [#allocation2]  }
  0x1b   : > { %v641_v1 = vld [vmem:[%s209_s30 + $0x4] ss:$16 sps:$4 sm:$0xff]   ;;  %v643_v2 = vld [vmem:[%s209_s30 + $0xc] ss:$16 sps:$4 sm:$0xff]   ;;  %v645_v3 = vld [vmem:[%s209_s30] ss:$16 sps:$4 sm:$0xff]  }
  0x1c   : > { %298 = vmatprep.subr.bf16.mxu0 %v641_v1  ;;  %v646_v4 = vld [vmem:[%s209_s30 + $0x8] ss:$16 sps:$4 sm:$0xff]   ;;  %339 = vmatprep.subr.bf16.mxu1 %v643_v2  ;;  %v647_v5 = vld [vmem:[%s209_s30 + $0x24] ss:$16 sps:$4 sm:$0xff]   ;;  %v649_v6 = vld [vmem:[%s209_s30 + $0x2c] ss:$16 sps:$4 sm:$0xff]  }
  0x1d   : > { %299 = vmatpush1.bf16.msra.mxu0 %v645_v3  ;;  %340 = vmatpush1.bf16.msra.mxu1 %v646_v4  ;;  %v651_v7 = vld [vmem:[%s209_s30 + $0x20] ss:$16 sps:$4 sm:$0xff]   ;;  %v652_v8 = vld [vmem:[%s209_s30 + $0x28] ss:$16 sps:$4 sm:$0xff]   ;;  %s661_s28 = sshll.u32 %s738_s27, 4  ;;  %s662_s28 = int_to_ptr.vmem [resolvable:$false] %s661_s28 }
  0x1e   : > { %300 = vmatprep.subr.bf16.mxu0 %v647_v5  ;;  %v229_v9 = vld [vmem:[%s209_s30 + $0x40] sm:$0x33]  ;;  %v230_v10 = vld [vmem:[%s209_s30 + $0x48] sm:$0x33]  ;;  %341 = vmatprep.subr.bf16.mxu1 %v649_v6  ;;  %s663_s29 = scalar_lea.vmem %s662_s28, 512  ;;  %p664_p1 = scmp.lt.s32.totalorder %s441_s10, %s662_s28 }
  0x1f   : > { %v567_v11 = vcombine.high %v229_v9, %v229_v9  ;;  %v569_v12 = vcombine.high %v230_v10, %v230_v10  ;;  %v566_v13 = vcombine.low %v229_v9, %v229_v9  ;;  %v568_v14 = vcombine.low %v230_v10, %v230_v10  ;;  %p665_p2 = scmp.lt.s32.totalorder %s663_s29, %s657_s23 }
  0x21   : > { %301 = vmatpush1.bf16.msra.mxu0 %v651_v7  ;;  %342 = vmatpush1.bf16.msra.mxu1 %v652_v8  ;;  %v287_v15 = vsel %vm285_vm0, %v566_v13, 0  ;;  %v293_v16 = vsel %vm285_vm0, %v568_v14, 0  ;;  %p666_p3 = por %p665_p2, %p664_p1 }
  0x22   : > { %570 = vmatprep.subr.msk.bf16.mxu0 %vm285_vm0, %v567_v11  ;;  %572 = vmatprep.subr.msk.bf16.mxu1 %vm285_vm0, %v569_v12 }
  0x23   : > { %p667_p5 = pnand %p666_p3, %p660_p0 }
  0x25   : > { %303 = vmatpush1.bf16.msra.mxu0 %v287_v15  ;;  %344 = vmatpush1.bf16.msra.mxu1 %v293_v16 }
  0x28   : > { %571 = vmatmul.mubr.msk.bf16.vlgmr.msra.gmra.mrb[0].mxu0 %vm281_vm1, %v220_v17  ;;  %573 = vmatmul.mubr.msk.bf16.vlgmr.msra.gmra.mrb[0].mxu1 %vm281_vm1, %v220_v17 }
  0xfb   : > { %v332_v18 = vpop.f32.mrb[0].mxu0  ;;  %v373_v19 = vpop.f32.mrb[0].mxu1 }
  0xfc   : > { %v405_v20 = vmul.f32 %v332_v18, %v332_v18  ;;  %v407_v21 = vmul.f32 %v373_v19, %v373_v19  ;;  %v334_v22 = vpop.f32.mrb[1].mxu0  ;;  %v375_v23 = vpop.f32.mrb[1].mxu1 }
  0xfd   : > { %v581_v24 = vpack.c.bf16 %v334_v22, %v332_v18  ;;  %v398_v25 = vadd.f32 %v334_v22, %v332_v18  ;;  %v406_v26 = vmul.f32 %v334_v22, %v334_v22  ;;  %v582_v27 = vpack.c.bf16 %v375_v23, %v373_v19  ;;  %v336_v28 = vpop.f32.mrb[2].mxu0  ;;  %v377_v29 = vpop.f32.mrb[2].mxu1 }
  0xfe   : > { %v337_v30 = vpop.f32.mrb[3].mxu0  ;;  %v378_v31 = vpop.f32.mrb[3].mxu1  ;;  %v408_v35 = vmul.f32 %v375_v23, %v375_v23 }
  0xff   : > { %396 = vst [vmem:[%s191_s8] sm:$0xff] %v581_v24  ;;  %397 = vst [vmem:[%s191_s8 + $0x8] sm:$0xff] %v582_v27  ;;  %v399_v32 = vadd.f32 %v398_v25, %v373_v19  ;;  %v409_v33 = vadd.f32 %v406_v26, %v405_v20 }
 0x101   : > { %v400_v34 = vadd.f32 %v399_v32, %v375_v23  ;;  %v410_v36 = vadd.f32 %v409_v33, %v407_v21 }
 0x103   : > { %401 = vadd.xlane.f32.xlu0 %v400_v34  ;;  %v411_v37 = vadd.f32 %v410_v36, %v408_v35 }
 0x107   : > { %412 = vadd.xlane.f32.xlu0 %v411_v37 }
 0x108   : > { %670 = shalt.err (!%p667_p5)
}
 0x109   : > { %s671_s15 = scalar_lea.hbm %s832_s19, 256  ;;  %s675_s5 = scalar_lea.hbm %s881_s2, 512 }
 0x10a   : > { %p672_p6 = scmp.ne.s32.totalorder %s832_s19, %s671_s15  ;;  %p676_p10 = scmp.lt.u32.totalorder %s832_s19, %s881_s2 }
 0x10b   : > { %p677_p11 = scmp.lt.u32.totalorder %s675_s5, %s671_s15  ;;  %p679_p13 = scmp.lt.u32.totalorder %s671_s15, %s832_s19 }
 0x10c   : > { %p673_p7 = pnand %p672_p6, %p799_p4 }
 0x10d   : > { %p678_p12 = por %p677_p11, %p676_p10 }
 0x10e   : > { %p674_p9 = pneg %p673_p7 }
 0x10f   : > { %p680_p0 = por %p679_p13, %p678_p12 }
 0x111   : > { %p681_p1 = pnand %p680_p0, %p674_p9 }
 0x113   : > { %684 = shalt.err (!%p681_p1)
}
 0x114   : > { %585 = dma.vmem_to_hbm [thread:$0]  (%p799_p4), %s441_s10, 256, %s832_s19, %s417_s21   ;;  %vm403_vm2 = vcmask 7168   ;;  %vm414_vm3 = vcmask 15368  }
 0x115   : > { %s557_s8 = sshll.u32 %s816_s26, 3 }
 0x116   : > { %s218_s18 = scalar_lea.vmem %s882_s3, %s557_s8 }
 0x190   : > { %v402_v38 = vpop.xlane.xlu0 %401 }
 0x191   : > { %404 = vst.msk [vmem:[%s218_s18] sm:$0xff] %vm403_vm2, %v402_v38 }
 0x194   : > { %v413_v39 = vpop.xlane.xlu0 %412 }
 0x195   : > { %415 = vst.msk [vmem:[%s218_s18] sm:$0xff] %vm414_vm3, %v413_v39 }
 0x196 PF: > { %p591_p2 = scmp.ge.s32.totalorder %s735_s17, 2  ;;  %s455_s22 = sand.u32 1, %s715_s12  }
 0x197   : > { %s456_s10 = scalar_lea.sflag [#allocation3], %s455_s22 }
 0x198   : > { %p588_p3 = pnand %p591_p2, %p806_p8 }
 0x19a   : > { %710 = dma.done.wait (!%p588_p3), %s456_s10, 256  }
 0x19b   : > { %712 = vsyncadd (!%p588_p3), %s456_s10, 4294967040  ;;  %s17_s17 = sadd.s32 1, %s735_s17   ;;  %s885_s12 = smov %s719_s13 }
 0x19c   : > { %p14_p4 = scmp.ge.s32.totalorder %s17_s17, 4   ;;  %s886_s13 = smov %s723_s14 }
 0x19d   : > { %s887_s14 = smov %s812_s25  ;;  %s888_s15 = smov %s731_s16 }
 0x19e   : > { %s889_s16 = smov %s891_s20  ;;  %16 = sbr.rel (!%p14_p4) target bundleno = 4 (0x4), region = 75 }
 0x1a5   :  { %471 = vsyncpa [#allocation3], 1 }
 0x1a6   :  { %473 = vsyncpa [#allocation3 + $0x1], 1 }

</bundles_post_ra>
